<compile_context>
chip_gen: v6e
topology: v6e:2x2x1
jax: 0.10.0
libtpu: 0.0.40
codegen_flags: <defaults>
</compile_context>

<pallas_src>
import functools

import jax
import jax.numpy as jnp
from jax import lax
from jax.experimental import pallas as pl
from jax.experimental.pallas import tpu as pltpu

_LANE = 128


def _integer_power(x, n):
    """Unrolled exponentiation-by-squaring (pure VPU multiplies, no pow/EUP)."""
    result = None
    base = x
    e = int(n)
    while e > 0:
        if e & 1:
            result = base if result is None else result * base
        e >>= 1
        if e:
            base = base * base
    if result is None:  # n == 0
        result = jnp.ones_like(x)
    return result


def _focal_loss_kernel(*refs, gamma, alpha_scalar, has_alpha_vec,
                       emit_per_sample, batch_size, tile_b, steps_per_partial):
    it = iter(refs)
    logits_ref = next(it)                      # (TB, C) native dtype
    labels_ref = next(it)                      # (TB, 1) int32
    alpha_ref = next(it) if has_alpha_vec else None   # (1, C) f32
    sum_ref = next(it)                         # (1, 128) f32, resident accumulator
    per_ref = next(it) if emit_per_sample else None   # (TB, 1) f32

    part = pl.program_id(0)   # 'parallel' axis (sharded across TCs on v7x)
    step = pl.program_id(1)   # 'arbitrary' reduction axis over batch tiles

    # Zero this partial's resident accumulator at the start of its sweep.
    @pl.when(step == 0)
    def _():
        sum_ref[...] = jnp.zeros_like(sum_ref)

    logits = logits_ref[...].astype(jnp.float32)   # cast in-kernel (bf16-friendly)
    labels = labels_ref[...]                       # (TB, 1) int32

    # Numerically stable log-softmax pieces (row-wise over classes).
    row_max = jnp.max(logits, axis=1, keepdims=True)                  # (TB, 1)
    shifted = logits - row_max                                        # (TB, C)
    lse = jnp.log(jnp.sum(jnp.exp(shifted), axis=1, keepdims=True))   # (TB, 1)

    # Select only the target-class entry (no dense one-hot float matmul).
    classes = lax.broadcasted_iota(jnp.int32, logits.shape, 1)        # (TB, C)
    is_target = labels == classes                                     # (TB, C) bool
    logit_t = jnp.sum(jnp.where(is_target, shifted, 0.0),
                      axis=1, keepdims=True)                          # (TB, 1)

    log_p_t = logit_t - lse                                           # (TB, 1)
    p_t = jnp.exp(log_p_t)
    one_minus = 1.0 - p_t

    g = float(gamma)
    if g == 2.0:                         # common default: plain VPU multiply
        focal = one_minus * one_minus
    elif g.is_integer() and g >= 0:
        focal = _integer_power(one_minus, int(g))
    else:
        focal = one_minus ** jnp.float32(g)

    if has_alpha_vec:
        alpha = alpha_ref[...].astype(jnp.float32)                    # (1, C)
        alpha_t = jnp.sum(jnp.where(is_target, alpha, 0.0),
                          axis=1, keepdims=True)                      # (TB, 1)
        per_sample = -alpha_t * focal * log_p_t
    else:
        # Scalar alpha folded at compile time: no extra cross-lane reduce.
        per_sample = (focal * log_p_t) * jnp.float32(-float(alpha_scalar))

    # Mask rows of the (possibly partially out-of-bounds) edge tile.  The mask
    # must precede both the store and the sum (garbage/NaN rows select 0.0).
    local_row = lax.broadcasted_iota(jnp.int32, per_sample.shape, 0)
    global_row = (part * steps_per_partial + step) * tile_b + local_row
    per_sample = jnp.where(global_row < batch_size, per_sample, 0.0)

    if emit_per_sample:
        per_ref[...] = per_sample
    sum_ref[...] += jnp.sum(per_sample)   # scalar broadcast over the 128-lane block


def _default_n_partials():
    """2 partials only on dual-TensorCore chips (v7x); 1 elsewhere."""
    try:
        kind = jax.devices()[0].device_kind.lower()
    except Exception:
        return 1
    return 2 if ("v7" in kind or "7x" in kind) else 1


def _vmem_limit_bytes():
    """Per-generation scoped VMEM limit (<=48 MiB on v7x, <=96 MiB on v5e/v6e)."""
    try:
        info = pltpu.get_tpu_info()
        cap = int(getattr(info, "vmem_capacity_bytes", 64 * 1024 * 1024))
    except Exception:
        cap = 64 * 1024 * 1024
    return int(min((cap * 3) // 4, 96 * 1024 * 1024))


def focal_loss(logits, labels, alpha=None, gamma=2.0, reduction="mean",
               block_b=1024, n_partials=None):
    """Pallas FocalLoss forward.

    logits: (B, C) float (any float dtype; streamed natively), labels: (B,) int.
    alpha:  None | python scalar | (C,) array.  Returns the reduced loss, or a
    (B,) vector for reduction='none'.
    """
    B, C = logits.shape
    labels2d = labels.reshape(B, 1).astype(jnp.int32)

    # --- alpha: compile-time scalar vs per-class vector -----------------------
    if alpha is None:
        has_alpha_vec, alpha_scalar, alpha_row = False, 1.0, None
    elif isinstance(alpha, (int, float)) and not isinstance(alpha, bool):
        has_alpha_vec, alpha_scalar, alpha_row = False, float(alpha), None
    else:
        arr = jnp.asarray(alpha, jnp.float32)
        if arr.ndim == 0:
            arr = jnp.broadcast_to(arr, (C,))
        has_alpha_vec, alpha_scalar = True, 1.0
        alpha_row = arr.reshape(1, C)

    # --- tile sizing from the per-generation VMEM budget ----------------------
    vmem_limit = _vmem_limit_bytes()
    in_bytes = jnp.dtype(logits.dtype).itemsize
    # 2 double-buffered input rows + ~4 live f32 (row, C) temporaries + slack.
    bytes_per_row = 2 * C * in_bytes + 4 * C * 4 + 2 * 4 + 64
    budget = vmem_limit // 2
    tile_b = budget // bytes_per_row
    tile_b = int(min(tile_b, int(block_b), ((B + 7) // 8) * 8))
    tile_b = max(8, (tile_b // 8) * 8)

    steps_total = -(-B // tile_b)

    n_part = _default_n_partials() if n_partials is None else max(1, int(n_partials))
    if steps_total < n_part or steps_total % n_part != 0:
        n_part = 1  # avoid fully out-of-bounds grid steps (no input padding used)
    steps_per_partial = steps_total // n_part

    emit_per_sample = (reduction == "none")

    kernel = functools.partial(
        _focal_loss_kernel,
        gamma=gamma, alpha_scalar=alpha_scalar, has_alpha_vec=has_alpha_vec,
        emit_per_sample=emit_per_sample, batch_size=B,
        tile_b=tile_b, steps_per_partial=steps_per_partial)

    row_map = lambda p, s: (p * steps_per_partial + s, 0)

    in_specs = [
        pl.BlockSpec((tile_b, C), row_map),          # logits tile (streamed, native dtype)
        pl.BlockSpec((tile_b, 1), row_map),          # labels tile
    ]
    inputs = [logits, labels2d]
    if has_alpha_vec:
        in_specs.append(pl.BlockSpec((1, C), lambda p, s: (0, 0)))  # resident alpha row
        inputs.append(alpha_row)

    out_shape = [jax.ShapeDtypeStruct((1, n_part * _LANE), jnp.float32)]   # partial sums
    out_specs = [pl.BlockSpec((1, _LANE), lambda p, s: (0, p))]            # lane-dense
    if emit_per_sample:
        out_shape.append(jax.ShapeDtypeStruct((B, 1), jnp.float32))        # per-sample loss
        out_specs.append(pl.BlockSpec((tile_b, 1), row_map))

    results = pl.pallas_call(
        kernel,
        out_shape=tuple(out_shape),
        grid_spec=pltpu.PrefetchScalarGridSpec(
            num_scalar_prefetch=0,
            grid=(n_part, steps_per_partial),
            in_specs=in_specs,
            out_specs=tuple(out_specs),
        ),
        compiler_params=pltpu.CompilerParams(
            dimension_semantics=("parallel", "arbitrary"),
            vmem_limit_bytes=vmem_limit,
        ),
    )(*inputs)

    if reduction == "none":
        return results[1][:, 0]
    total = jnp.sum(results[0].reshape(n_part, _LANE)[:, 0])
    if reduction == "mean":
        return total / jnp.float32(B)
    if reduction == "sum":
        return total
    raise ValueError(f"unknown reduction: {reduction}")


def focal_loss_ref(logits, labels, alpha=None, gamma=2.0, reduction="mean"):
    """Pure-JAX reference matching the PyTorch FocalLoss module exactly."""
    B, C = logits.shape
    log_p = jax.nn.log_softmax(logits.astype(jnp.float32), axis=1)
    p = jnp.exp(log_p)
    one_hot = jax.nn.one_hot(labels, C, dtype=jnp.float32)
    p_t = jnp.sum(p * one_hot, axis=1)
    log_p_t = jnp.sum(log_p * one_hot, axis=1)
    alpha_arr = jnp.asarray(1.0 if alpha is None else alpha, jnp.float32)
    alpha_t = jnp.sum(alpha_arr * one_hot, axis=1)
    loss = -alpha_t * (1.0 - p_t) ** gamma * log_p_t
    if reduction == "mean":
        return loss.mean()
    if reduction == "sum":
        return loss.sum()
    return loss


if __name__ == "__main__":
    # Small deterministic demo. B=50 is deliberately NOT a multiple of the tile
    # so the unpadded edge-tile masking path is exercised.
    batch_size, num_classes = 50, 16
    key = jax.random.PRNGKey(0)
    kx, kl, ka = jax.random.split(key, 3)
    logits = jax.random.normal(kx, (batch_size, num_classes), dtype=jnp.float32) * 3.0
    labels = jax.random.randint(kl, (batch_size,), 0, num_classes, dtype=jnp.int32)
    alpha_vec = jax.random.uniform(ka, (num_classes,), dtype=jnp.float32)

    # 1) Default module config: alpha=None (1.0), gamma=2, 'mean'; small tile
    #    forces a multi-step grid with a partially out-of-bounds edge tile.
    out1 = jax.block_until_ready(focal_loss(logits, labels, block_b=16))
    ref1 = focal_loss_ref(logits, labels)
    assert jnp.allclose(out1, ref1, rtol=1e-5, atol=1e-5), (out1, ref1)

    # 2) Per-class alpha vector + integer gamma=3 + 'sum'.
    out2 = jax.block_until_ready(
        focal_loss(logits, labels, alpha=alpha_vec, gamma=3, reduction="sum", block_b=16))
    ref2 = focal_loss_ref(logits, labels, alpha=alpha_vec, gamma=3, reduction="sum")
    assert jnp.allclose(out2, ref2, rtol=1e-5, atol=1e-5), (out2, ref2)

    # 3) Scalar alpha + 'none' (per-sample losses), single large tile.
    out3 = jax.block_until_ready(
        focal_loss(logits, labels, alpha=0.25, gamma=2, reduction="none"))
    ref3 = focal_loss_ref(logits, labels, alpha=0.25, gamma=2, reduction="none")
    assert jnp.allclose(out3, ref3, rtol=1e-5, atol=1e-5), (out3, ref3)

    # 4) Native bf16 logits are streamed without any wrapper-side f32 upcast.
    out4 = jax.block_until_ready(
        focal_loss(logits.astype(jnp.bfloat16), labels, block_b=16))
    ref4 = focal_loss_ref(logits.astype(jnp.bfloat16), labels)
    assert jnp.allclose(out4, ref4, rtol=1e-3, atol=1e-3), (out4, ref4)

    print("KERNEL_OK")
</pallas_src>

<mosaic_0001>
module attributes {stable_mosaic.version = 11 : i64} {
  func.func @_focal_loss_kernel(%arg0: i32, %arg1: i32, %arg2: memref<16x16xf32, #tpu.memory_space<vmem>>, %arg3: memref<16x1xi32, #tpu.memory_space<vmem>>, %arg4: memref<1x128xf32, #tpu.memory_space<vmem>>) attributes {dimension_semantics = [#tpu.dimension_semantics<parallel>, #tpu.dimension_semantics<arbitrary>], iteration_bounds = array<i64: 1, 4>, scalar_prefetch = 0 : i64, scratch_operands = 0 : i64, tpu.core_type = #tpu.core_type<tc>, window_params = [{transform_indices = @transform_0, window_bounds = array<i64: 16, 16>}, {transform_indices = @transform_1, window_bounds = array<i64: 16, 1>}, {transform_indices = @transform_2, window_bounds = array<i64: 1, 128>}]} {
    %c0_i32 = arith.constant 0 : i32
    %0 = arith.cmpi eq, %arg1, %c0_i32 : i32
    %1 = arith.extui %0 : i1 to i32
    %c0_i32_0 = arith.constant 0 : i32
    %2 = arith.cmpi ne, %1, %c0_i32_0 : i32
    scf.if %2 {
      %cst_15 = arith.constant 0.000000e+00 : f32
      %46 = vector.broadcast %cst_15 : f32 to vector<1x128xf32>
      %c0_16 = arith.constant 0 : index
      %c0_17 = arith.constant 0 : index
      %47 = vector.load %arg4[%c0_16, %c0_17] : memref<1x128xf32, #tpu.memory_space<vmem>>, vector<1x128xf32>
      tpu.vector_store %arg4[%c0_16, %c0_17], %46 {strides = array<i32>} : memref<1x128xf32, #tpu.memory_space<vmem>>, vector<1x128xf32>,
    } else {
    }
    %c0 = arith.constant 0 : index
    %c0_1 = arith.constant 0 : index
    %3 = vector.load %arg2[%c0, %c0_1] : memref<16x16xf32, #tpu.memory_space<vmem>>, vector<16x16xf32>
    %c0_2 = arith.constant 0 : index
    %c0_3 = arith.constant 0 : index
    %4 = vector.load %arg3[%c0_2, %c0_3] : memref<16x1xi32, #tpu.memory_space<vmem>>, vector<16x1xi32>
    %cst = arith.constant dense<0xFF800000> : vector<16xf32>
    %5 = vector.multi_reduction <maximumf>, %3, %cst [1] : vector<16x16xf32> to vector<16xf32>
    %6 = vector.shape_cast %5 : vector<16xf32> to vector<16x1xf32>
    %7 = vector.broadcast %6 : vector<16x1xf32> to vector<16x16xf32>
    %8 = arith.subf %3, %7 : vector<16x16xf32>
    %9 = math.exp %8 : vector<16x16xf32>
    %cst_4 = arith.constant dense<0.000000e+00> : vector<16xf32>
    %10 = vector.multi_reduction <add>, %9, %cst_4 [1] : vector<16x16xf32> to vector<16xf32>
    %11 = vector.shape_cast %10 : vector<16xf32> to vector<16x1xf32>
    %12 = math.log %11 : vector<16x1xf32>
    %13 = tpu.iota {dimensions = array<i32: 1>} : vector<16x16xi32>
    %14 = vector.broadcast %4 : vector<16x1xi32> to vector<16x16xi32>
    %15 = arith.cmpi eq, %14, %13 : vector<16x16xi32>
    %cst_5 = arith.constant 0.000000e+00 : f32
    %16 = vector.broadcast %cst_5 : f32 to vector<16x16xf32>
    %17 = arith.select %15, %8, %16 : vector<16x16xi1>, vector<16x16xf32>
    %cst_6 = arith.constant dense<0.000000e+00> : vector<16xf32>
    %18 = vector.multi_reduction <add>, %17, %cst_6 [1] : vector<16x16xf32> to vector<16xf32>
    %19 = vector.shape_cast %18 : vector<16xf32> to vector<16x1xf32>
    %20 = arith.subf %19, %12 : vector<16x1xf32>
    %21 = math.exp %20 : vector<16x1xf32>
    %cst_7 = arith.constant 1.000000e+00 : f32
    %22 = vector.broadcast %cst_7 : f32 to vector<16x1xf32>
    %23 = arith.subf %22, %21 : vector<16x1xf32>
    %24 = arith.mulf %23, %23 : vector<16x1xf32>
    %25 = arith.mulf %24, %20 : vector<16x1xf32>
    %cst_8 = arith.constant -1.000000e+00 : f32
    %26 = vector.broadcast %cst_8 : f32 to vector<16x1xf32>
    %27 = arith.mulf %25, %26 : vector<16x1xf32>
    %28 = tpu.iota {dimensions = array<i32: 0>} : vector<16x1xi32>
    %c4_i32 = arith.constant 4 : i32
    %29 = arith.muli %arg0, %c4_i32 : i32
    %30 = arith.addi %29, %arg1 : i32
    %c16_i32 = arith.constant 16 : i32
    %31 = arith.muli %30, %c16_i32 : i32
    %32 = vector.broadcast %31 : i32 to vector<16x1xi32>
    %33 = arith.addi %32, %28 : vector<16x1xi32>
    %c50_i32 = arith.constant 50 : i32
    %34 = vector.broadcast %c50_i32 : i32 to vector<16x1xi32>
    %35 = arith.cmpi slt, %33, %34 : vector<16x1xi32>
    %cst_9 = arith.constant 0.000000e+00 : f32
    %36 = vector.broadcast %cst_9 : f32 to vector<16x1xf32>
    %37 = arith.select %35, %27, %36 : vector<16x1xi1>, vector<16x1xf32>
    %c0_10 = arith.constant 0 : index
    %c0_11 = arith.constant 0 : index
    %38 = vector.load %arg4[%c0_10, %c0_11] : memref<1x128xf32, #tpu.memory_space<vmem>>, vector<1x128xf32>
    %39 = vector.shape_cast %37 : vector<16x1xf32> to vector<1x16x1xf32>
    %cst_12 = arith.constant dense<0.000000e+00> : vector<1xf32>
    %40 = vector.multi_reduction <add>, %39, %cst_12 [1, 2] : vector<1x16x1xf32> to vector<1xf32>
    %41 = vector.shape_cast %40 : vector<1xf32> to vector<1x1x1xf32>
    %42 = vector.extract %41[0, 0, 0] : f32 from vector<1x1x1xf32>
    %43 = vector.broadcast %42 : f32 to vector<1x128xf32>
    %44 = arith.addf %38, %43 : vector<1x128xf32>
    %c0_13 = arith.constant 0 : index
    %c0_14 = arith.constant 0 : index
    %45 = vector.load %arg4[%c0_13, %c0_14] : memref<1x128xf32, #tpu.memory_space<vmem>>, vector<1x128xf32>
    tpu.vector_store %arg4[%c0_13, %c0_14], %44 {strides = array<i32>} : memref<1x128xf32, #tpu.memory_space<vmem>>, vector<1x128xf32>,
    return
  }
  func.func @transform_0(%arg0: i32, %arg1: i32) -> (i32, i32) {
    %c4_i32 = arith.constant 4 : i32
    %0 = arith.muli %arg0, %c4_i32 : i32
    %1 = arith.addi %0, %arg1 : i32
    %c0_i32 = arith.constant 0 : i32
    %c0_i32_0 = arith.constant 0 : i32
    return %1, %c0_i32 : i32, i32
  }
  func.func @transform_1(%arg0: i32, %arg1: i32) -> (i32, i32) {
    %c4_i32 = arith.constant 4 : i32
    %0 = arith.muli %arg0, %c4_i32 : i32
    %1 = arith.addi %0, %arg1 : i32
    %c0_i32 = arith.constant 0 : i32
    %c0_i32_0 = arith.constant 0 : i32
    return %1, %c0_i32 : i32, i32
  }
  func.func @transform_2(%arg0: i32, %arg1: i32) -> (i32, i32) {
    %c0_i32 = arith.constant 0 : i32
    %c0_i32_0 = arith.constant 0 : i32
    return %c0_i32, %arg0 : i32, i32
  }
}

</mosaic_0001>

<bundles_post_ra>
// kernel: tpu_custom_call.1
= control target key start
LH: loop header
LB: loop body
LE: loop exit
PB: predicated region body
PF: predicated region fallthrough
CT: control target
= control target key end

     0   :  { %7 = vsyncpa [#allocation3], 0  ;;  %s537_s9 = smov 0   ;;  %s539_s10 = smov 0   ;;  %s599_s0 = inlined_call_operand.vmem [shape: f32[50,16], index: 0, kind: input, shape index: {}]   ;;  %s600_s1 = inlined_call_operand.vmem [shape: s32[50,1], index: 1, kind: input, shape index: {}]   ;;  %s601_s2 = inlined_call_operand.hbm [shape: f32[1,128], index: 2, kind: output, shape index: {}]  }
   0x1   :  { %s541_s11 = smov 0  }
   0x2 LB: > { %s404_s12 = sadd.s32 4294967295, %s517_s11   ;;  %s22_s13 = sadd.s32 1, %s513_s10  ;;  %s517_s11 = sphi %s541_s11, %s13_s11   ;;  %s513_s10 = sphi %s539_s10, %s604_s10   ;;  %s509_s9 = sphi %s537_s9, %s603_s9  }
   0x3   : > { %p23_p0 = scmp.ge.s32.totalorder %s22_s13, 4  ;;  %p407_p1 = scmp.ge.s32.totalorder %s517_s11, 1 }
   0x4   : > { %p169_p2 = scmp.lt.s32.totalorder %s517_s11, 5 }
   0x5   : > { %s606_s13 = smov (%p23_p0, %s22_s13), 0 }
   0x6   : > { %p170_p3 = pnand %p407_p1, %p169_p2 }
   0x7   : > { %s408_s14 = sshll.u32 (!%p170_p3), %s509_s9, 1  ;;  %p412_p5 = scmp.ne.s32.totalorder (!%p170_p3), %s509_s9, 0 }
   0x8   : > { %173 = sbr.rel (%p170_p3) target bundleno = 575 (0x23f), region = 28  ;;  %p210_p4 = scmp.lt.s32.totalorder (!%p170_p3), %s408_s14, 6 }
   0xd   : > { %s608_s14 = smov (!%p210_p4, %s408_s14), 6  ;;  %242 = sbr.rel (%p412_p5) target bundleno = 20 (0x14), region = 32 }
   0xe   : > { %s409_s15 = sshll.u32 %s608_s14, 3 }
   0xf   : > { %s213_s18 = scalar_lea.vmem %s599_s0, %s409_s15  ;;  %s231_s21 = scalar_lea.vmem %s600_s1, %s409_s15 }
  0x12   : > { %v519_v0 = vmov 0.0  }
  0x13   : > { %243 = vst [vmem:[#allocation2] sm:$0x1] %v519_v0 }
  0x14 PF: > { %v244_v1 = vld [vmem:[%s213_s18] sm:$0xff]  ;;  %vm248_vm0 = vcmask 130048   ;;  %v245_v2 = vld [vmem:[%s213_s18 + $0x8] sm:$0xff]  ;;  %v520_v5 = vmov 0   ;;  %v271_v14 = vlaneseq  ;;  %s413_s22 = sshll.u32 %s509_s9, 4  ;;  %vm317_vm5 = vcmask 7168  }
  0x15   : > { %v246_v3 = vld [vmem:[%s231_s21] sm:$0xff]  ;;  %v249_v4 = vsel %vm248_vm0, %v244_v1, -inf  ;;  %453 = vset.pattern.permute.xlu1 %v520_v5  ;;  %454 = vset.pattern.permute.xlu0 %v520_v5  ;;  %v252_v6 = vsel %vm248_vm0, %v245_v2, -inf  ;;  %v247_v7 = vld [vmem:[%s231_s21 + $0x8] sm:$0xff]  ;;  %v309_v41 = vstv %s413_s22  ;;  %s521_s23 = smov [#allocation2]   ;;  %p575_p6 = scmp.eq.s32.totalorder %s404_s12, 3 }
  0x16   : > { %250 = vmax.xlane.f32.xlu0 %v249_v4  ;;  %274 = vperm.xlu1 %453, %v246_v3   ;;  %v272_v16 = vand.u32 127, %v271_v14  ;;  %v304_v39 = vshrl.u32 %v271_v14, 7  ;;  %s342_s24 = sshll.u32 %s521_s23, 4  ;;  %s343_s24 = int_to_ptr.vmem [resolvable:$true] %s342_s24 }
  0x17   : > { %s467_s27 = scalar_lea.vmem %s343_s24, 16  ;;  %s473_s28 = scalar_lea.vmem %s343_s24, 32 }
  0x18   : > { %v305_v42 = vadd.s32 8, %v304_v39  ;;  %v310_v45 = vadd.s32 %v309_v41, %v304_v39  ;;  %p468_p7 = scmp.ne.s32.totalorder %s343_s24, %s467_s27  ;;  %p474_p10 = scmp.lt.s32.totalorder %s343_s24, %s343_s24 }
  0x19   : > { %p475_p11 = scmp.lt.s32.totalorder %s473_s28, %s467_s27 }
  0x1a   : > { %253 = vmax.xlane.f32.xlu0 %v252_v6  ;;  %277 = vperm.xlu1 %453, %v247_v7   ;;  %v311_v48 = vadd.s32 %v309_v41, %v305_v42  ;;  %vm312_vm3 = vcmp.lt.s32.totalorder %v310_v45, 50  ;;  %p469_p8 = pnand %p468_p7, %p575_p6 }
  0x1b   : > { %p476_p12 = por %p475_p11, %p474_p10 }
  0x1c   : > { %vm313_vm4 = vcmp.lt.s32.totalorder %v311_v48, 50  ;;  %p470_p9 = pneg %p469_p8 }
  0x1e   : > { %p477_p13 = pnand %p476_p12, %p470_p9 }
  0x91   : > { %v275_v15 = vpop.permute.xlu1 %274 }
  0x92   : > { %vm279_vm1 = vcmp.eq.s32.totalorder %v275_v15, %v272_v16 }
  0x95   : > { %v278_v18 = vpop.permute.xlu1 %277 }
  0x96   : > { %vm280_vm2 = vcmp.eq.s32.totalorder %v278_v18, %v272_v16 }
  0x9f   : > { %v251_v8 = vpop.xlane.xlu0 %250 }
  0xa0   : > { %v255_v9 = vsub.f32 %v244_v1, %v251_v8  ;;  %v316_v1 = vld [vmem:[#allocation2] sm:$0x1] }
  0xa2   : > { %v257_v10 = vmul.f32 1.442695, %v255_v9  ;;  %v281_v20 = vsel %vm279_vm1, %v255_v9, 0.0 }
  0xa3   : > { %v254_v11 = vpop.xlane.xlu0 %253  ;;  %v283_v22 = vsel %vm248_vm0, %v281_v20, 0.0 }
  0xa4   : > { %455 = vpow2.f32 %v257_v10  ;;  %v256_v12 = vsub.f32 %v245_v2, %v254_v11 }
  0xa6   : > { %v259_v13 = vmul.f32 1.442695, %v256_v12  ;;  %v282_v24 = vsel %vm280_vm2, %v256_v12, 0.0 }
  0xa7   : > { %v286_v25 = vsel %vm248_vm0, %v282_v24, 0.0 }
  0xa8   : > { %457 = vpow2.f32 %v259_v13 }
  0xb1   : > { %v456_v17 = vpop.eup %455 }
  0xb2   : > { %v261_v19 = vsel %vm248_vm0, %v456_v17, 0.0 }
  0xb3   : > { %262 = vadd.xlane.f32.xlu0 %v261_v19 }
  0xb5   : > { %v458_v21 = vpop.eup %457 }
  0xb6   : > { %v264_v23 = vsel %vm248_vm0, %v458_v21, 0.0 }
  0xb7   : > { %284 = vadd.xlane.f32.xlu0 %v283_v22  ;;  %265 = vadd.xlane.f32.xlu1 %v264_v23 }
  0xbb   : > { %287 = vadd.xlane.f32.xlu0 %v286_v25 }
 0x13c   : > { %v263_v26 = vpop.xlane.xlu0 %262 }
 0x13d   : > { %459 = vlog2.f32 %v263_v26 }
 0x140   : > { %v266_v27 = vpop.xlane.xlu1 %265  ;;  %v285_v29 = vpop.xlane.xlu0 %284 }
 0x141   : > { %461 = vlog2.f32 %v266_v27 }
 0x144   : > { %v288_v35 = vpop.xlane.xlu0 %287 }
 0x14a   : > { %v460_v28 = vpop.eup %459 }
 0x14b   : > { %v268_v30 = vmul.f32 0.6931472, %v460_v28 }
 0x14d   : > { %v289_v31 = vsub.f32 %v285_v29, %v268_v30 }
 0x14e   : > { %v462_v32 = vpop.eup %461 }
 0x14f   : > { %v291_v33 = vmul.f32 1.442695, %v289_v31  ;;  %v270_v34 = vmul.f32 0.6931472, %v462_v32 }
 0x151   : > { %463 = vpow2.f32 %v291_v33  ;;  %v290_v36 = vsub.f32 %v288_v35, %v270_v34 }
 0x153   : > { %v293_v37 = vmul.f32 1.442695, %v290_v36 }
 0x155   : > { %465 = vpow2.f32 %v293_v37 }
 0x15e   : > { %v464_v38 = vpop.eup %463 }
 0x15f   : > { %v295_v40 = vsub.f32 1.0, %v464_v38 }
 0x161   : > { %v297_v43 = vmul.f32 %v295_v40, %v295_v40 }
 0x162   : > { %v466_v44 = vpop.eup %465 }
 0x163   : > { %v299_v46 = vmul.f32 %v297_v43, %v289_v31  ;;  %v296_v47 = vsub.f32 1.0, %v466_v44 }
 0x165   : > { %v301_v49 = vmul.f32 -1.0, %v299_v46  ;;  %v298_v50 = vmul.f32 %v296_v47, %v296_v47 }
 0x167   : > { %v300_v51 = vmul.f32 %v298_v50, %v290_v36  ;;  %v314_v53 = vsel %vm312_vm3, %v301_v49, 0.0 }
 0x168   : > { %v318_v55 = vsel %vm317_vm5, %v314_v53, 0.0 }
 0x169   : > { %v302_v52 = vmul.f32 -1.0, %v300_v51 }
 0x16b   : > { %v315_v54 = vsel %vm313_vm4, %v302_v52, 0.0 }
 0x16c   : > { %v319_v56 = vsel %vm317_vm5, %v315_v54, 0.0 }
 0x16d   : > { %v320_v57 = vadd.f32 %v319_v56, %v318_v55 }
 0x16f   : > { %321 = vadd.xlane.f32.xlu0 %v320_v57 }
 0x1f8   : > { %v322_v58 = vpop.xlane.xlu0 %321 }
 0x1f9   : > { %v323_v59 = vrot.slane %v322_v58, 4 }
 0x1fb   : > { %v324_v60 = vadd.f32 %v323_v59, %v322_v58 }
 0x1fd   : > { %v325_v61 = vrot.slane %v324_v60, 2 }
 0x1ff   : > { %v326_v62 = vadd.f32 %v325_v61, %v324_v60 }
 0x201   : > { %v327_v63 = vrot.slane %v326_v62, 1 }
 0x203   : > { %v328_v0 = vadd.f32 %v327_v63, %v326_v62 }
 0x205   : > { %418 = vpush %v328_v0 }
 0x236   : > { %s419_s25 = spop %418 }
 0x237   : > { %v330_v2 = vstv %s419_s25 }
 0x238   : > { %v331_v3 = vadd.f32 %v330_v2, %v316_v1 }
 0x23a   : > { %332 = vst [vmem:[#allocation2] sm:$0x1] %v331_v3 }
 0x23b   : > { %480 = shalt.err (!%p477_p13)
}
 0x23c   : > { %421 = dma.vmem_to_hbm [thread:$0]  (%p575_p6), %s343_s24, 16, %s601_s2, [#allocation3]  }
 0x23d   : > { %504 = dma.done.wait (%p575_p6), [#allocation3], 16  }
 0x23e   : > { %506 = vsyncadd (%p575_p6), [#allocation3], 4294967280 }
 0x23f PF: > { %s13_s11 = sadd.s32 1, %s517_s11   ;;  %s603_s9 = smov %s513_s10 }
 0x240   : > { %p10_p0 = scmp.ge.s32.totalorder %s13_s11, 6   ;;  %s604_s10 = smov %s606_s13 }
 0x242   :  { %12 = sbr.rel (!%p10_p0) target bundleno = 2 (0x2), region = 63 }
 0x247   :  { %355 = vsyncpa [#allocation3], 1 }
 0x248   :  { %357 = vsyncpa [#allocation3 + $0x1], 1 }

</bundles_post_ra>
